<compile_context>
chip_gen: v5e
topology: v5e:2x2
jax: 0.10.0
libtpu: 0.0.40
codegen_flags: <defaults>
</compile_context>

<pallas_src>
import functools

import jax
import jax.numpy as jnp
from jax.experimental import pallas as pl
from jax.experimental.pallas import tpu as pltpu


_VMEM = pl.BlockSpec(memory_space=pltpu.MemorySpace.VMEM)
_BN_SCALE = float(1.0 / (1.0 + 1e-5) ** 0.5)   # eval-mode BN, default stats


# ----------------------------------------------------------------------------
# Shared math: used verbatim by the Pallas kernel and by the numerics-matched
# mirror (guarantees the correctness check exercises identical arithmetic).
# ----------------------------------------------------------------------------
def _resnet_math(x, pool, weights, biases, flags):
    """x: [MP, CP] f32, pool: [B, MP] bf16, weights[i]: [CP, CP] bf16,
    biases[i]: [1, CP] f32.  MXU matmuls take bf16 inputs with f32
    accumulation; bias / ReLU / residual add stay in f32."""
    h = x
    idx = 0
    for has_sc in flags:
        hb = h.astype(jnp.bfloat16)
        t = jnp.dot(hb, weights[idx],
                    preferred_element_type=jnp.float32) + biases[idx]
        t = jnp.maximum(t, 0.0)                                        # relu(bn1(conv1))
        t = jnp.dot(t.astype(jnp.bfloat16), weights[idx + 1],
                    preferred_element_type=jnp.float32) + biases[idx + 1]   # bn2(conv2)
        idx += 2
        if has_sc:
            sc = jnp.dot(hb, weights[idx],
                         preferred_element_type=jnp.float32) + biases[idx]  # bn(conv) shortcut
            idx += 1
        else:
            sc = h                                                     # identity shortcut
        h = jnp.maximum(t + sc, 0.0)                                   # relu(out + shortcut)
    pooled = jnp.dot(pool, h.astype(jnp.bfloat16),
                     preferred_element_type=jnp.float32)               # avg_pool1d as matmul
    return jnp.dot(pooled.astype(jnp.bfloat16), weights[idx],
                   preferred_element_type=jnp.float32) + biases[idx]   # fc


def _make_kernel(flags, n_params):
    """Fused ResidualNetwork kernel; `flags[i]` == block i has a conv shortcut."""
    def kernel(x_ref, pool_ref, w_ref, b_ref, out_ref):
        weights = [w_ref[i] for i in range(n_params)]    # static-index VMEM loads
        biases = [b_ref[i] for i in range(n_params)]
        out_ref[...] = _resnet_math(x_ref[...], pool_ref[...], weights, biases, flags)
    return kernel


# ----------------------------------------------------------------------------
# Wrapper / layout plumbing
# ----------------------------------------------------------------------------
def _pad2(a, rows, cols):
    return jnp.zeros((rows, cols), a.dtype).at[:a.shape[0], :a.shape[1]].set(a)


def _pad_row(v, cols):
    return jnp.zeros((1, cols), jnp.float32).at[0, :v.shape[0]].set(v)


def _prepare_inputs(x, cp):
    """[B, Cin, L] (NCL) -> lane-dense [MP, CP] features + [B, MP] pooling matrix."""
    b, cin, length = x.shape
    m = b * length
    mp = ((m + 7) // 8) * 8                                   # sublane-aligned rows
    x2d = jnp.transpose(x, (0, 2, 1)).reshape(m, cin)
    x2d = _pad2(x2d, mp, cp)
    pool_core = jnp.repeat(jnp.eye(b, dtype=jnp.float32), length, axis=1) / float(length)
    pool = jnp.zeros((b, mp), jnp.float32).at[:, :m].set(pool_core).astype(jnp.bfloat16)
    return x2d, pool


def pack_params(raw, cp):
    """Fold eval-mode BN into the k=1 convs, transpose to [in, out], zero-pad
    channel dims to `cp`, stack everything: weights -> one bf16 [NP, cp, cp]
    tensor, biases -> one f32 [NP, 1, cp] tensor. Returns (w_stack, b_stack, flags)."""
    ws, bs, flags = [], [], []
    for blk in raw["blocks"]:
        has_sc = "ws" in blk
        flags.append(has_sc)
        ws.append(_pad2((blk["w1"] * _BN_SCALE).T, cp, cp))
        bs.append(_pad_row(blk["b1"] * _BN_SCALE, cp))
        ws.append(_pad2((blk["w2"] * _BN_SCALE).T, cp, cp))
        bs.append(_pad_row(blk["b2"] * _BN_SCALE, cp))
        if has_sc:
            ws.append(_pad2((blk["ws"] * _BN_SCALE).T, cp, cp))
            bs.append(_pad_row(blk["bs"] * _BN_SCALE, cp))
    ws.append(_pad2(raw["fc_w"].T, cp, cp))
    bs.append(_pad_row(raw["fc_b"], cp))
    w_stack = jnp.stack(ws).astype(jnp.bfloat16)              # [NP, cp, cp]
    b_stack = jnp.stack(bs)                                   # [NP, 1, cp] f32
    return w_stack, b_stack, tuple(flags)


def residual_network_forward(x, w_stack, b_stack, flags, out_ch, cp=128):
    b = x.shape[0]
    x2d, pool = _prepare_inputs(x, cp)
    out = pl.pallas_call(
        _make_kernel(flags, w_stack.shape[0]),
        out_shape=jax.ShapeDtypeStruct((b, cp), jnp.float32),   # lane-dense output slab
        in_specs=[_VMEM, _VMEM, _VMEM, _VMEM],
        out_specs=_VMEM,
    )(x2d, pool, w_stack, b_stack)
    return out[:, :out_ch]


# ----------------------------------------------------------------------------
# Parameter init (deterministic, synthetic) and pure-JAX f32 reference
# ----------------------------------------------------------------------------
def init_params(key, num_blocks, in_ch, out_ch):
    def rnd(k, shape):
        return jax.random.normal(k, shape, jnp.float32)

    blocks = []
    ch_in = in_ch
    keys = jax.random.split(key, num_blocks + 1)
    for i in range(num_blocks):
        kk = jax.random.split(keys[i], 6)
        blk = {
            "w1": rnd(kk[0], (out_ch, ch_in)) / (ch_in ** 0.5),
            "b1": rnd(kk[1], (out_ch,)) * 0.1,
            "w2": rnd(kk[2], (out_ch, out_ch)) / (out_ch ** 0.5),
            "b2": rnd(kk[3], (out_ch,)) * 0.1,
        }
        if ch_in != out_ch:
            blk["ws"] = rnd(kk[4], (out_ch, ch_in)) / (ch_in ** 0.5)
            blk["bs"] = rnd(kk[5], (out_ch,)) * 0.1
        blocks.append(blk)
        ch_in = out_ch
    kk = jax.random.split(keys[-1], 2)
    return {
        "blocks": blocks,
        "fc_w": rnd(kk[0], (out_ch, out_ch)) / (out_ch ** 0.5),
        "fc_b": rnd(kk[1], (out_ch,)) * 0.1,
    }


def residual_network_ref(x, raw, eps=1e-5):
    """Pure-JAX f32 mirror of the PyTorch module (eval-mode BatchNorm)."""
    scale = 1.0 / (1.0 + eps) ** 0.5
    hp = "highest"
    h = x                                                            # [B, Cin, L]
    for blk in raw["blocks"]:
        t = jnp.einsum("oc,bcl->bol", blk["w1"], h, precision=hp) + blk["b1"][None, :, None]
        t = jnp.maximum(t * scale, 0.0)
        t = (jnp.einsum("oc,bcl->bol", blk["w2"], t, precision=hp)
             + blk["b2"][None, :, None]) * scale
        if "ws" in blk:
            sc = (jnp.einsum("oc,bcl->bol", blk["ws"], h, precision=hp)
                  + blk["bs"][None, :, None]) * scale
        else:
            sc = h
        h = jnp.maximum(t + sc, 0.0)
    pooled = jnp.mean(h, axis=2)                                     # avg_pool1d + squeeze
    return jnp.dot(pooled, raw["fc_w"].T, precision=hp) + raw["fc_b"]


# ----------------------------------------------------------------------------
if __name__ == "__main__":
    B, L = 8, 16            # batch, sequence length (Conv1d NCL layout)
    IN_CH, OUT_CH = 12, 32
    NUM_BLOCKS = 2
    CP = 128                # channel dims zero-padded to one full lane width

    key = jax.random.PRNGKey(0)
    kx, kp = jax.random.split(key)
    x = jax.random.normal(kx, (B, IN_CH, L), jnp.float32)

    raw_params = init_params(kp, NUM_BLOCKS, IN_CH, OUT_CH)
    w_stack, b_stack, flags = pack_params(raw_params, CP)

    fwd = jax.jit(functools.partial(residual_network_forward,
                                    flags=flags, out_ch=OUT_CH, cp=CP))
    out = fwd(x, w_stack, b_stack)
    jax.block_until_ready(out)

    # 1) Numerics-matched mirror: identical math graph (same bf16 MXU-input
    #    casts, same folded/padded weights) run through plain XLA.
    x2d, pool = _prepare_inputs(x, CP)
    np_ = w_stack.shape[0]
    mirror = _resnet_math(x2d, pool,
                          [w_stack[i] for i in range(np_)],
                          [b_stack[i] for i in range(np_)], flags)[:, :OUT_CH]

    # 2) f32 eval-mode reference reproducing the PyTorch module directly.
    ref = residual_network_ref(x, raw_params)

    assert out.shape == (B, OUT_CH)
    assert bool(jnp.all(jnp.isfinite(out)))
    assert jnp.allclose(out, mirror, atol=2e-3, rtol=2e-3)
    assert jnp.allclose(out, ref, atol=1e-1, rtol=1e-1)   # bf16 MXU inputs vs f32 math

    print("KERNEL_OK")
</pallas_src>

<mosaic_0001>
module attributes {stable_mosaic.version = 11 : i64} {
  func.func @kernel(%arg0: memref<128x128xf32, #tpu.memory_space<vmem>>, %arg1: memref<8x128xbf16, #tpu.memory_space<vmem>>, %arg2: memref<6x128x128xbf16, #tpu.memory_space<vmem>>, %arg3: memref<6x1x128xf32, #tpu.memory_space<vmem>>, %arg4: memref<8x128xf32, #tpu.memory_space<vmem>>) attributes {dimension_semantics = [], scalar_prefetch = 0 : i64, scratch_operands = 0 : i64, tpu.core_type = #tpu.core_type<tc>} {
    %c0 = arith.constant 0 : index
    %c0_0 = arith.constant 0 : index
    %c0_1 = arith.constant 0 : index
    %0 = vector.load %arg2[%c0, %c0_0, %c0_1] : memref<6x128x128xbf16, #tpu.memory_space<vmem>>, vector<1x128x128xbf16>
    %1 = vector.shape_cast %0 : vector<1x128x128xbf16> to vector<128x128xbf16>
    %c1 = arith.constant 1 : index
    %c0_2 = arith.constant 0 : index
    %c0_3 = arith.constant 0 : index
    %2 = vector.load %arg2[%c1, %c0_2, %c0_3] : memref<6x128x128xbf16, #tpu.memory_space<vmem>>, vector<1x128x128xbf16>
    %3 = vector.shape_cast %2 : vector<1x128x128xbf16> to vector<128x128xbf16>
    %c2 = arith.constant 2 : index
    %c0_4 = arith.constant 0 : index
    %c0_5 = arith.constant 0 : index
    %4 = vector.load %arg2[%c2, %c0_4, %c0_5] : memref<6x128x128xbf16, #tpu.memory_space<vmem>>, vector<1x128x128xbf16>
    %5 = vector.shape_cast %4 : vector<1x128x128xbf16> to vector<128x128xbf16>
    %c3 = arith.constant 3 : index
    %c0_6 = arith.constant 0 : index
    %c0_7 = arith.constant 0 : index
    %6 = vector.load %arg2[%c3, %c0_6, %c0_7] : memref<6x128x128xbf16, #tpu.memory_space<vmem>>, vector<1x128x128xbf16>
    %7 = vector.shape_cast %6 : vector<1x128x128xbf16> to vector<128x128xbf16>
    %c4 = arith.constant 4 : index
    %c0_8 = arith.constant 0 : index
    %c0_9 = arith.constant 0 : index
    %8 = vector.load %arg2[%c4, %c0_8, %c0_9] : memref<6x128x128xbf16, #tpu.memory_space<vmem>>, vector<1x128x128xbf16>
    %9 = vector.shape_cast %8 : vector<1x128x128xbf16> to vector<128x128xbf16>
    %c5 = arith.constant 5 : index
    %c0_10 = arith.constant 0 : index
    %c0_11 = arith.constant 0 : index
    %10 = vector.load %arg2[%c5, %c0_10, %c0_11] : memref<6x128x128xbf16, #tpu.memory_space<vmem>>, vector<1x128x128xbf16>
    %11 = vector.shape_cast %10 : vector<1x128x128xbf16> to vector<128x128xbf16>
    %c0_12 = arith.constant 0 : index
    %c0_13 = arith.constant 0 : index
    %c0_14 = arith.constant 0 : index
    %12 = vector.load %arg3[%c0_12, %c0_13, %c0_14] : memref<6x1x128xf32, #tpu.memory_space<vmem>>, vector<1x1x128xf32>
    %13 = vector.shape_cast %12 : vector<1x1x128xf32> to vector<1x128xf32>
    %c1_15 = arith.constant 1 : index
    %c0_16 = arith.constant 0 : index
    %c0_17 = arith.constant 0 : index
    %14 = vector.load %arg3[%c1_15, %c0_16, %c0_17] : memref<6x1x128xf32, #tpu.memory_space<vmem>>, vector<1x1x128xf32>
    %15 = vector.shape_cast %14 : vector<1x1x128xf32> to vector<1x128xf32>
    %c2_18 = arith.constant 2 : index
    %c0_19 = arith.constant 0 : index
    %c0_20 = arith.constant 0 : index
    %16 = vector.load %arg3[%c2_18, %c0_19, %c0_20] : memref<6x1x128xf32, #tpu.memory_space<vmem>>, vector<1x1x128xf32>
    %17 = vector.shape_cast %16 : vector<1x1x128xf32> to vector<1x128xf32>
    %c3_21 = arith.constant 3 : index
    %c0_22 = arith.constant 0 : index
    %c0_23 = arith.constant 0 : index
    %18 = vector.load %arg3[%c3_21, %c0_22, %c0_23] : memref<6x1x128xf32, #tpu.memory_space<vmem>>, vector<1x1x128xf32>
    %19 = vector.shape_cast %18 : vector<1x1x128xf32> to vector<1x128xf32>
    %c4_24 = arith.constant 4 : index
    %c0_25 = arith.constant 0 : index
    %c0_26 = arith.constant 0 : index
    %20 = vector.load %arg3[%c4_24, %c0_25, %c0_26] : memref<6x1x128xf32, #tpu.memory_space<vmem>>, vector<1x1x128xf32>
    %21 = vector.shape_cast %20 : vector<1x1x128xf32> to vector<1x128xf32>
    %c5_27 = arith.constant 5 : index
    %c0_28 = arith.constant 0 : index
    %c0_29 = arith.constant 0 : index
    %22 = vector.load %arg3[%c5_27, %c0_28, %c0_29] : memref<6x1x128xf32, #tpu.memory_space<vmem>>, vector<1x1x128xf32>
    %23 = vector.shape_cast %22 : vector<1x1x128xf32> to vector<1x128xf32>
    %c0_30 = arith.constant 0 : index
    %c0_31 = arith.constant 0 : index
    %24 = vector.load %arg0[%c0_30, %c0_31] : memref<128x128xf32, #tpu.memory_space<vmem>>, vector<128x128xf32>
    %c0_32 = arith.constant 0 : index
    %c0_33 = arith.constant 0 : index
    %25 = vector.load %arg1[%c0_32, %c0_33] : memref<8x128xbf16, #tpu.memory_space<vmem>>, vector<8x128xbf16>
    %26 = arith.truncf %24 : vector<128x128xf32> to vector<128x128xbf16>
    %cst = arith.constant dense<0.000000e+00> : vector<128x128xf32>
    %27 = tpu.matmul %26, %1, %cst {dimension_numbers = #tpu.dot_dimension_numbers<[1], [0], [0], [1], [0, 0, 1, 1], [], []>} : vector<128x128xbf16>, vector<128x128xbf16>, vector<128x128xf32> -> vector<128x128xf32>
    %28 = vector.broadcast %13 : vector<1x128xf32> to vector<128x128xf32>
    %29 = arith.addf %27, %28 : vector<128x128xf32>
    %cst_34 = arith.constant 0.000000e+00 : f32
    %30 = vector.broadcast %cst_34 : f32 to vector<128x128xf32>
    %31 = arith.maximumf %29, %30 : vector<128x128xf32>
    %32 = arith.truncf %31 : vector<128x128xf32> to vector<128x128xbf16>
    %cst_35 = arith.constant dense<0.000000e+00> : vector<128x128xf32>
    %33 = tpu.matmul %32, %3, %cst_35 {dimension_numbers = #tpu.dot_dimension_numbers<[1], [0], [0], [1], [0, 0, 1, 1], [], []>} : vector<128x128xbf16>, vector<128x128xbf16>, vector<128x128xf32> -> vector<128x128xf32>
    %34 = vector.broadcast %15 : vector<1x128xf32> to vector<128x128xf32>
    %35 = arith.addf %33, %34 : vector<128x128xf32>
    %cst_36 = arith.constant dense<0.000000e+00> : vector<128x128xf32>
    %36 = tpu.matmul %26, %5, %cst_36 {dimension_numbers = #tpu.dot_dimension_numbers<[1], [0], [0], [1], [0, 0, 1, 1], [], []>} : vector<128x128xbf16>, vector<128x128xbf16>, vector<128x128xf32> -> vector<128x128xf32>
    %37 = vector.broadcast %17 : vector<1x128xf32> to vector<128x128xf32>
    %38 = arith.addf %36, %37 : vector<128x128xf32>
    %39 = arith.addf %35, %38 : vector<128x128xf32>
    %cst_37 = arith.constant 0.000000e+00 : f32
    %40 = vector.broadcast %cst_37 : f32 to vector<128x128xf32>
    %41 = arith.maximumf %39, %40 : vector<128x128xf32>
    %42 = arith.truncf %41 : vector<128x128xf32> to vector<128x128xbf16>
    %cst_38 = arith.constant dense<0.000000e+00> : vector<128x128xf32>
    %43 = tpu.matmul %42, %7, %cst_38 {dimension_numbers = #tpu.dot_dimension_numbers<[1], [0], [0], [1], [0, 0, 1, 1], [], []>} : vector<128x128xbf16>, vector<128x128xbf16>, vector<128x128xf32> -> vector<128x128xf32>
    %44 = vector.broadcast %19 : vector<1x128xf32> to vector<128x128xf32>
    %45 = arith.addf %43, %44 : vector<128x128xf32>
    %cst_39 = arith.constant 0.000000e+00 : f32
    %46 = vector.broadcast %cst_39 : f32 to vector<128x128xf32>
    %47 = arith.maximumf %45, %46 : vector<128x128xf32>
    %48 = arith.truncf %47 : vector<128x128xf32> to vector<128x128xbf16>
    %cst_40 = arith.constant dense<0.000000e+00> : vector<128x128xf32>
    %49 = tpu.matmul %48, %9, %cst_40 {dimension_numbers = #tpu.dot_dimension_numbers<[1], [0], [0], [1], [0, 0, 1, 1], [], []>} : vector<128x128xbf16>, vector<128x128xbf16>, vector<128x128xf32> -> vector<128x128xf32>
    %50 = vector.broadcast %21 : vector<1x128xf32> to vector<128x128xf32>
    %51 = arith.addf %49, %50 : vector<128x128xf32>
    %52 = arith.addf %51, %41 : vector<128x128xf32>
    %cst_41 = arith.constant 0.000000e+00 : f32
    %53 = vector.broadcast %cst_41 : f32 to vector<128x128xf32>
    %54 = arith.maximumf %52, %53 : vector<128x128xf32>
    %55 = arith.truncf %54 : vector<128x128xf32> to vector<128x128xbf16>
    %cst_42 = arith.constant dense<0.000000e+00> : vector<8x128xf32>
    %56 = tpu.matmul %25, %55, %cst_42 {dimension_numbers = #tpu.dot_dimension_numbers<[1], [0], [0], [1], [0, 0, 1, 1], [], []>} : vector<8x128xbf16>, vector<128x128xbf16>, vector<8x128xf32> -> vector<8x128xf32>
    %57 = arith.truncf %56 : vector<8x128xf32> to vector<8x128xbf16>
    %cst_43 = arith.constant dense<0.000000e+00> : vector<8x128xf32>
    %58 = tpu.matmul %57, %11, %cst_43 {dimension_numbers = #tpu.dot_dimension_numbers<[1], [0], [0], [1], [0, 0, 1, 1], [], []>} : vector<8x128xbf16>, vector<128x128xbf16>, vector<8x128xf32> -> vector<8x128xf32>
    %59 = vector.broadcast %23 : vector<1x128xf32> to vector<8x128xf32>
    %60 = arith.addf %58, %59 : vector<8x128xf32>
    %c0_44 = arith.constant 0 : index
    %c0_45 = arith.constant 0 : index
    %61 = vector.load %arg4[%c0_44, %c0_45] : memref<8x128xf32, #tpu.memory_space<vmem>>, vector<8x128xf32>
    tpu.vector_store %arg4[%c0_44, %c0_45], %60 {strides = array<i32>} : memref<8x128xf32, #tpu.memory_space<vmem>>, vector<8x128xf32>,
    return
  }
}

</mosaic_0001>

<bundles_post_ra>
// kernel: residual_network_forward.1
= control target key start
LH: loop header
LB: loop body
LE: loop exit
PB: predicated region body
PF: predicated region fallthrough
CT: control target
= control target key end

     0   :  { %s1666_s0 = inlined_call_operand.vmem [shape: f32[128,128], index: 0, kind: input, shape index: {}]   ;;  %s1667_s1 = inlined_call_operand.vmem [shape: bf16[8,128], index: 1, kind: input, shape index: {}]   ;;  %s1668_s2 = inlined_call_operand.vmem [shape: bf16[6,128,128], index: 2, kind: input, shape index: {}]   ;;  %s1669_s3 = inlined_call_operand.vmem [shape: f32[6,1,128], index: 3, kind: input, shape index: {}]   ;;  %s1670_s4 = inlined_call_operand.hbm [shape: f32[8,128], index: 4, kind: output, shape index: {}]  }
   0x1   :  { %v1162_v0 = vld [vmem:[%s1668_s2 + $0x38] sm:$0xff]  ;;  %v1161_v1 = vld [vmem:[%s1668_s2 + $0x30] sm:$0xff]  ;;  %v1160_v2 = vld [vmem:[%s1668_s2 + $0x28] sm:$0xff] }
   0x2   :  { %206 = vmatpush.bf16.msra.mxu0 %v1162_v0  ;;  %1203 = vmatpush.bf16.msra.mxu1 %v1162_v0 }
   0x3   :  { %1204 = vmatpush.bf16.msra.mxu3 %v1162_v0 }
   0x6   :  { %207 = vmatpush.bf16.msra.mxu0 %v1161_v1  ;;  %1205 = vmatpush.bf16.msra.mxu1 %v1161_v1 }
   0x7   :  { %9 = vsyncpa [#allocation3], 0  ;;  %1206 = vmatpush.bf16.msra.mxu3 %v1161_v1  ;;  %v1159_v3 = vld [vmem:[%s1668_s2 + $0x20] sm:$0xff]  ;;  %v1158_v4 = vld [vmem:[%s1668_s2 + $0x18] sm:$0xff]  ;;  %s1252_s24 = smov [#allocation2]   ;;  %s869_s27 = sshll.u32 %s1670_s4, 4  ;;  %s870_s27 = int_to_ptr.hbm [resolvable:$true] %s869_s27 }
   0x8   :  { %v1157_v5 = vld [vmem:[%s1668_s2 + $0x10] sm:$0xff]  ;;  %v1156_v6 = vld [vmem:[%s1668_s2 + $0x8] sm:$0xff]  ;;  %v1155_v7 = vld [vmem:[%s1668_s2] sm:$0xff]  ;;  %s867_s25 = sshll.u32 %s1252_s24, 4  ;;  %s868_s25 = int_to_ptr.vmem [resolvable:$true] %s867_s25 }
   0x9   :  { %v130_v8 = vld [vmem:[%s1666_s0] sm:$0xff]  ;;  %v131_v9 = vld [vmem:[%s1666_s0 + $0x8] sm:$0xff]  ;;  %v136_v11 = vld [vmem:[%s1666_s0 + $0x30] sm:$0xff] }
   0xa   :  { %208 = vmatpush.bf16.msra.mxu0 %v1160_v2  ;;  %1207 = vmatpush.bf16.msra.mxu1 %v1160_v2  ;;  %v147_v10 = vpack.c.bf16 %v131_v9, %v130_v8  ;;  %v137_v12 = vld [vmem:[%s1666_s0 + $0x38] sm:$0xff]  ;;  %v140_v14 = vld [vmem:[%s1666_s0 + $0x50] sm:$0xff]  ;;  %v1176_v21 = vld [vmem:[%s1668_s2 + $0xa8] sm:$0xff] }
   0xb   :  { %1208 = vmatpush.bf16.msra.mxu3 %v1160_v2  ;;  %v150_v13 = vpack.c.bf16 %v137_v12, %v136_v11  ;;  %v141_v15 = vld [vmem:[%s1666_s0 + $0x58] sm:$0xff]  ;;  %v1177_v18 = vld [vmem:[%s1668_s2 + $0xb0] sm:$0xff]  ;;  %v1168_v24 = vld [vmem:[%s1668_s2 + $0x68] sm:$0xff] }
   0xc   :  { %v152_v16 = vpack.c.bf16 %v141_v15, %v140_v14  ;;  %v1178_v17 = vld [vmem:[%s1668_s2 + $0xb8] sm:$0xff]  ;;  %v1169_v20 = vld [vmem:[%s1668_s2 + $0x70] sm:$0xff]  ;;  %v138_v26 = vld [vmem:[%s1666_s0 + $0x40] sm:$0xff] }
   0xd   :  { %430 = vmatpush.bf16.msra.mxu2 %v1178_v17  ;;  %v1170_v19 = vld [vmem:[%s1668_s2 + $0x78] sm:$0xff]  ;;  %v132_v22 = vld [vmem:[%s1666_s0 + $0x10] sm:$0xff]  ;;  %v139_v27 = vld [vmem:[%s1666_s0 + $0x48] sm:$0xff] }
   0xe   :  { %209 = vmatpush.bf16.msra.mxu0 %v1159_v3  ;;  %1209 = vmatpush.bf16.msra.mxu1 %v1159_v3  ;;  %v133_v23 = vld [vmem:[%s1666_s0 + $0x18] sm:$0xff]  ;;  %v1175_v28 = vld [vmem:[%s1668_s2 + $0xa0] sm:$0xff]  ;;  %v143_v30 = vld [vmem:[%s1666_s0 + $0x68] sm:$0xff]  ;;  %v151_v31 = vpack.c.bf16 %v139_v27, %v138_v26 }
   0xf   :  { %1210 = vmatpush.bf16.msra.mxu3 %v1159_v3  ;;  %v148_v25 = vpack.c.bf16 %v133_v23, %v132_v22  ;;  %v142_v29 = vld [vmem:[%s1666_s0 + $0x60] sm:$0xff]  ;;  %v1174_v33 = vld [vmem:[%s1668_s2 + $0x98] sm:$0xff]  ;;  %v1173_v35 = vld [vmem:[%s1668_s2 + $0x90] sm:$0xff] }
  0x10   :  { %v153_v32 = vpack.c.bf16 %v143_v30, %v142_v29  ;;  %v1167_v34 = vld [vmem:[%s1668_s2 + $0x60] sm:$0xff]  ;;  %v1172_v36 = vld [vmem:[%s1668_s2 + $0x88] sm:$0xff]  ;;  %v144_v41 = vld [vmem:[%s1666_s0 + $0x70] sm:$0xff] }
  0x11   :  { %431 = vmatpush.bf16.msra.mxu2 %v1177_v18  ;;  %v134_v37 = vld [vmem:[%s1666_s0 + $0x20] sm:$0xff]  ;;  %v135_v38 = vld [vmem:[%s1666_s0 + $0x28] sm:$0xff]  ;;  %v145_v42 = vld [vmem:[%s1666_s0 + $0x78] sm:$0xff] }
  0x12   :  { %210 = vmatpush.bf16.msra.mxu0 %v1158_v4  ;;  %1211 = vmatpush.bf16.msra.mxu1 %v1158_v4  ;;  %v149_v39 = vpack.c.bf16 %v135_v38, %v134_v37  ;;  %v1171_v40 = vld [vmem:[%s1668_s2 + $0x80] sm:$0xff]  ;;  %v154_v43 = vpack.c.bf16 %v145_v42, %v144_v41  ;;  %v1166_v44 = vld [vmem:[%s1668_s2 + $0x58] sm:$0xff]  ;;  %v1165_v45 = vld [vmem:[%s1668_s2 + $0x50] sm:$0xff] }
  0x13   :  { %1212 = vmatpush.bf16.msra.mxu3 %v1158_v4  ;;  %v1164_v46 = vld [vmem:[%s1668_s2 + $0x48] sm:$0xff]  ;;  %v1163_v47 = vld [vmem:[%s1668_s2 + $0x40] sm:$0xff]  ;;  %v1186_v22 = vld [vmem:[%s1668_s2 + $0xf8] sm:$0xff] }
  0x14   :  { %v1401_v49 = vld [vmem:[%s1669_s3] ss:$0 sm:$0xff]  ;;  %v1185_v30 = vld [vmem:[%s1668_s2 + $0xf0] sm:$0xff] }
  0x15   :  { %432 = vmatpush.bf16.msra.mxu2 %v1176_v21  ;;  %v1181_v41 = vld [vmem:[%s1668_s2 + $0xd0] sm:$0xff] }
  0x16   :  { %211 = vmatpush.bf16.msra.mxu0 %v1157_v5  ;;  %1213 = vmatpush.bf16.msra.mxu1 %v1157_v5 }
  0x17   :  { %1214 = vmatpush.bf16.msra.mxu3 %v1157_v5 }
  0x19   :  { %433 = vmatpush.bf16.msra.mxu2 %v1175_v28 }
  0x1a   :  { %212 = vmatpush.bf16.msra.mxu0 %v1156_v6  ;;  %1215 = vmatpush.bf16.msra.mxu1 %v1156_v6 }
  0x1b   :  { %1216 = vmatpush.bf16.msra.mxu3 %v1156_v6 }
  0x1d   :  { %434 = vmatpush.bf16.msra.mxu2 %v1174_v33 }
  0x1e   :  { %213 = vmatpush.bf16.msra.mxu0 %v1155_v7  ;;  %1217 = vmatpush.bf16.msra.mxu1 %v1155_v7 }
  0x1f   :  { %1218 = vmatpush.bf16.msra.mxu3 %v1155_v7 }
  0x21   :  { %214 = vmatmul.bf16.vlgmr.msra.gmra.mxu0 %v147_v10  ;;  %229 = vmatmul.bf16.vlgmr.msra.gmra.mxu1 %v150_v13 }
  0x22   :  { %239 = vmatmul.bf16.vlgmr.msra.gmra.mxu3 %v152_v16  ;;  %330 = vmatpush.bf16.msrb.mxu1 %v1170_v19 }
  0x23   :  { %435 = vmatpush.bf16.msra.mxu2 %v1173_v35  ;;  %570 = vmatpush.bf16.msrb.mxu3 %v1186_v22 }
  0x26   :  { %331 = vmatpush.bf16.msrb.mxu1 %v1169_v20 }
  0x27   :  { %436 = vmatpush.bf16.msra.mxu2 %v1172_v36  ;;  %571 = vmatpush.bf16.msrb.mxu3 %v1185_v30 }
  0x2a   :  { %332 = vmatpush.bf16.msrb.mxu1 %v1168_v24 }
  0x2b   :  { %437 = vmatpush.bf16.msra.mxu2 %v1171_v40 }
  0x2e   :  { %333 = vmatpush.bf16.msrb.mxu1 %v1167_v34  ;;  %438 = vmatmul.bf16.vlgmr.msra.gmra.mxu2 %v147_v10  ;;  %v1183_v34 = vld [vmem:[%s1668_s2 + $0xe0] sm:$0xff] }
  0x31   :  { %219 = vmatmul.bf16.gmra.mxu0 %v148_v25  ;;  %234 = vmatmul.bf16.gmra.mxu1 %v151_v31 }
  0x32   :  { %244 = vmatmul.bf16.gmra.mxu3 %v153_v32  ;;  %334 = vmatpush.bf16.msrb.mxu1 %v1166_v44 }
  0x36   :  { %335 = vmatpush.bf16.msrb.mxu1 %v1165_v45 }
  0x3a   :  { %336 = vmatpush.bf16.msrb.mxu1 %v1164_v46 }
  0x3e   :  { %443 = vmatmul.bf16.gmra.mxu2 %v148_v25  ;;  %337 = vmatpush.bf16.msrb.mxu1 %v1163_v47  ;;  %v1179_v47 = vld [vmem:[%s1668_s2 + $0xc0] sm:$0xff] }
  0x41   :  { %224 = vmatmul.bf16.gmra.mxu0 %v149_v39 }
  0x42   :  { %249 = vmatmul.bf16.gmra.mxu3 %v154_v43 }
  0x4e   :  { %448 = vmatmul.bf16.gmra.mxu2 %v149_v39  ;;  %v1182_v39 = vld [vmem:[%s1668_s2 + $0xd8] sm:$0xff] }
  0x5e   :  { %453 = vmatmul.bf16.gmra.mxu2 %v150_v13 }
  0x6e   :  { %458 = vmatmul.bf16.gmra.mxu2 %v151_v31  ;;  %v1184_v31 = vld [vmem:[%s1668_s2 + $0xe8] sm:$0xff] }
  0x6f   :  { %572 = vmatpush.bf16.msrb.mxu3 %v1184_v31 }
  0x73   :  { %573 = vmatpush.bf16.msrb.mxu3 %v1183_v34 }
  0x77   :  { %574 = vmatpush.bf16.msrb.mxu3 %v1182_v39 }
  0x7b   :  { %575 = vmatpush.bf16.msrb.mxu3 %v1181_v41 }
  0x7e   :  { %463 = vmatmul.bf16.gmra.mxu2 %v152_v16 }
  0x8e   :  { %468 = vmatmul.bf16.gmra.mxu2 %v153_v32 }
  0x9e   :  { %v215_v48 = vpop.f32.mrf.mxu0  ;;  %473 = vmatmul.bf16.gmra.mxu2 %v154_v43  ;;  %v230_v0 = vpop.f32.mrf.mxu1  ;;  %v1180_v43 = vld [vmem:[%s1668_s2 + $0xc8] sm:$0xff] }
  0x9f   :  { %v216_v50 = vadd.f32 %v1401_v49, %v215_v48  ;;  %v231_v8 = vadd.f32 %v1401_v49, %v230_v0  ;;  %576 = vmatpush.bf16.msrb.mxu3 %v1180_v43 }
  0xa1   :  { %v255_v53 = vmax.f32 %v216_v50, 0.0  ;;  %v261_v11 = vmax.f32 %v231_v8, 0.0 }
  0xa3   :  { %577 = vmatpush.bf16.msrb.mxu3 %v1179_v47 }
  0xa5   :  { %v240_v14 = vpop.f32.mrf.mxu3 }
  0xa6   :  { %v217_v51 = vpop.f32.mrf.mxu0  ;;  %v232_v7 = vpop.f32.mrf.mxu1  ;;  %v241_v24 = vadd.f32 %v1401_v49, %v240_v14 }
  0xa7   :  { %v218_v52 = vadd.f32 %v1401_v49, %v217_v51  ;;  %v233_v9 = vadd.f32 %v1401_v49, %v232_v7 }
  0xa8   :  { %v265_v26 = vmax.f32 %v241_v24, 0.0 }
  0xa9   :  { %v256_v54 = vmax.f32 %v218_v52, 0.0  ;;  %v262_v12 = vmax.f32 %v233_v9, 0.0 }
  0xab   :  { %v271_v55 = vpack.c.bf16 %v256_v54, %v255_v53  ;;  %v274_v13 = vpack.c.bf16 %v262_v12, %v261_v11 }
  0xad   :  { %338 = vmatmul.bf16.vlgmr.msrb.gmra.mxu1 %v271_v55  ;;  %v242_v20 = vpop.f32.mrf.mxu3  ;;  %v1446_v55 = vld [vmem:[%s1669_s3 + $0x2] ss:$0 sm:$0xff] }
  0xae   :  { %v220_v56 = vpop.f32.mrf.mxu0  ;;  %v235_v10 = vpop.f32.mrf.mxu1  ;;  %v243_v25 = vadd.f32 %v1401_v49, %v242_v20 }
  0xaf   :  { %v221_v57 = vadd.f32 %v1401_v49, %v220_v56  ;;  %v236_v16 = vadd.f32 %v1401_v49, %v235_v10 }
  0xb0   :  { %v266_v27 = vmax.f32 %v243_v25, 0.0 }
  0xb1   :  { %v257_v60 = vmax.f32 %v221_v57, 0.0  ;;  %v263_v18 = vmax.f32 %v236_v16, 0.0  ;;  %v439_v38 = vpop.f32.mrf.mxu2 }
  0xb2   :  { %v276_v28 = vpack.c.bf16 %v266_v27, %v265_v26  ;;  %v440_v56 = vadd.f32 %v1446_v55, %v439_v38 }
  0xb5   :  { %v245_v23 = vpop.f32.mrf.mxu3 }
  0xb6   :  { %v222_v58 = vpop.f32.mrf.mxu0  ;;  %v237_v15 = vpop.f32.mrf.mxu1  ;;  %v246_v32 = vadd.f32 %v1401_v49, %v245_v23 }
  0xb7   :  { %v223_v59 = vadd.f32 %v1401_v49, %v222_v58  ;;  %v238_v17 = vadd.f32 %v1401_v49, %v237_v15 }
  0xb8   :  { %v267_v36 = vmax.f32 %v246_v32, 0.0 }
  0xb9   :  { %v258_v61 = vmax.f32 %v223_v59, 0.0  ;;  %v264_v19 = vmax.f32 %v238_v17, 0.0  ;;  %v441_v46 = vpop.f32.mrf.mxu2 }
  0xbb   :  { %v272_v62 = vpack.c.bf16 %v258_v61, %v257_v60  ;;  %v275_v21 = vpack.c.bf16 %v264_v19, %v263_v18  ;;  %v442_v61 = vadd.f32 %v1446_v55, %v441_v46 }
  0xbd   :  { %343 = vmatmul.bf16.gmra.mxu1 %v272_v62  ;;  %v247_v29 = vpop.f32.mrf.mxu3 }
  0xbe   :  { %v225_v63 = vpop.f32.mrf.mxu0  ;;  %v248_v33 = vadd.f32 %v1401_v49, %v247_v29 }
  0xbf   :  { %v226_v1 = vadd.f32 %v1401_v49, %v225_v63 }
  0xc0   :  { %v268_v37 = vmax.f32 %v248_v33, 0.0 }
  0xc1   :  { %v259_v4 = vmax.f32 %v226_v1, 0.0  ;;  %v444_v52 = vpop.f32.mrf.mxu2 }
  0xc2   :  { %v277_v40 = vpack.c.bf16 %v268_v37, %v267_v36 }
  0xc5   :  { %v250_v35 = vpop.f32.mrf.mxu3 }
  0xc6   :  { %v227_v2 = vpop.f32.mrf.mxu0  ;;  %v251_v44 = vadd.f32 %v1401_v49, %v250_v35 }
  0xc7   :  { %v228_v3 = vadd.f32 %v1401_v49, %v227_v2 }
  0xc8   :  { %v269_v48 = vmax.f32 %v251_v44, 0.0 }
  0xc9   :  { %v260_v5 = vmax.f32 %v228_v3, 0.0  ;;  %v446_v53 = vpop.f32.mrf.mxu2 }
  0xca   :  { %v447_v9 = vadd.f32 %v1446_v55, %v446_v53 }
  0xcb   :  { %v273_v6 = vpack.c.bf16 %v260_v5, %v259_v4  ;;  %v445_v5 = vadd.f32 %v1446_v55, %v444_v52 }
  0xcd   :  { %348 = vmatmul.bf16.gmra.mxu1 %v273_v6  ;;  %v252_v42 = vpop.f32.mrf.mxu3 }
  0xce   :  { %v253_v45 = vadd.f32 %v1401_v49, %v252_v42  ;;  %v1451_v49 = vld [vmem:[%s1669_s3 + $0x1] ss:$0 sm:$0xff] }
  0xd0   :  { %v270_v50 = vmax.f32 %v253_v45, 0.0 }
  0xd1   :  { %v449_v59 = vpop.f32.mrf.mxu2 }
  0xd2   :  { %v278_v51 = vpack.c.bf16 %v270_v50, %v269_v48  ;;  %v450_v17 = vadd.f32 %v1446_v55, %v449_v59 }
  0xd9   :  { %v451_v4 = vpop.f32.mrf.mxu2 }
  0xda   :  { %v452_v22 = vadd.f32 %v1446_v55, %v451_v4 }
  0xdd   :  { %353 = vmatmul.bf16.gmra.mxu1 %v274_v13 }
  0xe1   :  { %v454_v12 = vpop.f32.mrf.mxu2 }
  0xe2   :  { %v455_v30 = vadd.f32 %v1446_v55, %v454_v12 }
  0xe9   :  { %v456_v19 = vpop.f32.mrf.mxu2 }
  0xea   :  { %v457_v34 = vadd.f32 %v1446_v55, %v456_v19 }
  0xed   :  { %358 = vmatmul.bf16.gmra.mxu1 %v275_v21 }
  0xf1   :  { %v459_v29 = vpop.f32.mrf.mxu2 }
  0xf2   :  { %v460_v43 = vadd.f32 %v1446_v55, %v459_v29 }
  0xf9   :  { %v461_v36 = vpop.f32.mrf.mxu2 }
  0xfa   :  { %v462_v47 = vadd.f32 %v1446_v55, %v461_v36 }
  0xfd   :  { %363 = vmatmul.bf16.gmra.mxu1 %v276_v28 }
 0x101   :  { %v464_v42 = vpop.f32.mrf.mxu2 }
 0x109   :  { %v466_v53 = vpop.f32.mrf.mxu2 }
 0x10d   :  { %368 = vmatmul.bf16.gmra.mxu1 %v277_v40 }
 0x11d   :  { %373 = vmatmul.bf16.gmra.mxu1 %v278_v51 }
 0x12a   :  { %v339_v54 = vpop.f32.mrf.mxu1 }
 0x12b   :  { %v340_v57 = vadd.f32 %v1451_v49, %v339_v54 }
 0x12d   :  { %v1455_v60 = vadd.f32 %v440_v56, %v340_v57  ;;  %v465_v57 = vadd.f32 %v1446_v55, %v464_v42  ;;  %v1189_v42 = vld [vmem:[%s1668_s2 + $0x110] sm:$0xff] }
 0x12f   :  { %v495_v0 = vmax.f32 %v1455_v60, 0.0 }
 0x132   :  { %v341_v58 = vpop.f32.mrf.mxu1 }
 0x133   :  { %v342_v62 = vadd.f32 %v1451_v49, %v341_v58 }
 0x135   :  { %v1459_v63 = vadd.f32 %v442_v61, %v342_v62  ;;  %v469_v61 = vpop.f32.mrf.mxu2 }
 0x137   :  { %v496_v1 = vmax.f32 %v1459_v63, 0.0 }
 0x139   :  { %v511_v2 = vpack.c.bf16 %v496_v1, %v495_v0 }
 0x13a   :  { %v344_v3 = vpop.f32.mrf.mxu1 }
 0x13b   :  { %578 = vmatmul.bf16.vlgmr.msrb.gmra.mxu3 %v511_v2  ;;  %v345_v6 = vadd.f32 %v1451_v49, %v344_v3  ;;  %v467_v2 = vadd.f32 %v1446_v55, %v466_v53 }
 0x13d   :  { %v1469_v8 = vadd.f32 %v445_v5, %v345_v6  ;;  %v471_v12 = vpop.f32.mrf.mxu2 }
 0x13f   :  { %v497_v13 = vmax.f32 %v1469_v8, 0.0 }
 0x142   :  { %v346_v7 = vpop.f32.mrf.mxu1 }
 0x143   :  { %v347_v10 = vadd.f32 %v1451_v49, %v346_v7 }
 0x145   :  { %v1473_v11 = vadd.f32 %v447_v9, %v347_v10  ;;  %v1194_v10 = vld [vmem:[%s1668_s2 + $0x138] sm:$0xff]  ;;  %v474_v29 = vpop.f32.mrf.mxu2 }
 0x146   :  { %694 = vmatpush.bf16.msrb.mxu0 %v1194_v10  ;;  %v475_v36 = vadd.f32 %v1446_v55, %v474_v29 }
 0x147   :  { %v498_v14 = vmax.f32 %v1473_v11, 0.0 }
 0x149   :  { %v512_v15 = vpack.c.bf16 %v498_v14, %v497_v13 }
 0x14a   :  { %v349_v16 = vpop.f32.mrf.mxu1 }
 0x14b   :  { %583 = vmatmul.bf16.gmra.mxu3 %v512_v15  ;;  %v350_v18 = vadd.f32 %v1451_v49, %v349_v16  ;;  %v1193_v15 = vld [vmem:[%s1668_s2 + $0x130] sm:$0xff]  ;;  %v470_v16 = vadd.f32 %v1446_v55, %v469_v61 }
 0x14c   :  { %695 = vmatpush.bf16.msrb.mxu0 %v1193_v15 }
 0x14d   :  { %v1483_v21 = vadd.f32 %v450_v17, %v350_v18  ;;  %v1192_v18 = vld [vmem:[%s1668_s2 + $0x128] sm:$0xff] }
 0x14f   :  { %v499_v25 = vmax.f32 %v1483_v21, 0.0 }
 0x150   :  { %696 = vmatpush.bf16.msrb.mxu0 %v1192_v18 }
 0x152   :  { %v351_v20 = vpop.f32.mrf.mxu1 }
 0x153   :  { %v352_v23 = vadd.f32 %v1451_v49, %v351_v20 }
 0x155   :  { %v1487_v24 = vadd.f32 %v452_v22, %v352_v23  ;;  %v472_v22 = vadd.f32 %v1446_v55, %v471_v12 }
 0x157   :  { %v500_v26 = vmax.f32 %v1487_v24, 0.0 }
 0x159   :  { %v513_v27 = vpack.c.bf16 %v500_v26, %v499_v25 }
 0x15a   :  { %v354_v28 = vpop.f32.mrf.mxu1 }
 0x15b   :  { %588 = vmatmul.bf16.gmra.mxu3 %v513_v27  ;;  %v355_v31 = vadd.f32 %v1451_v49, %v354_v28  ;;  %v1191_v28 = vld [vmem:[%s1668_s2 + $0x120] sm:$0xff] }
 0x15c   :  { %697 = vmatpush.bf16.msrb.mxu0 %v1191_v28 }
 0x15d   :  { %v1497_v33 = vadd.f32 %v455_v30, %v355_v31 }
 0x15f   :  { %v501_v38 = vmax.f32 %v1497_v33, 0.0 }
 0x162   :  { %v356_v32 = vpop.f32.mrf.mxu1 }
 0x163   :  { %v357_v35 = vadd.f32 %v1451_v49, %v356_v32 }
 0x165   :  { %v1501_v37 = vadd.f32 %v457_v34, %v357_v35  ;;  %v1190_v35 = vld [vmem:[%s1668_s2 + $0x118] sm:$0xff] }
 0x166   :  { %698 = vmatpush.bf16.msrb.mxu0 %v1190_v35 }
 0x167   :  { %v502_v39 = vmax.f32 %v1501_v37, 0.0 }
 0x169   :  { %v514_v40 = vpack.c.bf16 %v502_v39, %v501_v38 }
 0x16a   :  { %v359_v41 = vpop.f32.mrf.mxu1  ;;  %699 = vmatpush.bf16.msrb.mxu0 %v1189_v42 }
 0x16b   :  { %593 = vmatmul.bf16.gmra.mxu3 %v514_v40  ;;  %v360_v44 = vadd.f32 %v1451_v49, %v359_v41  ;;  %v476_v41 = vpop.f32.mrf.mxu2 }
 0x16d   :  { %v1511_v46 = vadd.f32 %v460_v43, %v360_v44 }
 0x16f   :  { %v503_v51 = vmax.f32 %v1511_v46, 0.0  ;;  %v1198_v46 = vld [vmem:[%s1668_s2 + $0x158] sm:$0xff] }
 0x172   :  { %v361_v45 = vpop.f32.mrf.mxu1 }
 0x173   :  { %v362_v48 = vadd.f32 %v1451_v49, %v361_v45  ;;  %v477_v45 = vadd.f32 %v1446_v55, %v476_v41 }
 0x175   :  { %v1515_v50 = vadd.f32 %v462_v47, %v362_v48  ;;  %v1188_v48 = vld [vmem:[%s1668_s2 + $0x108] sm:$0xff] }
 0x176   :  { %700 = vmatpush.bf16.msrb.mxu0 %v1188_v48 }
 0x177   :  { %v504_v52 = vmax.f32 %v1515_v50, 0.0  ;;  %v1199_v50 = vld [vmem:[%s1668_s2 + $0x160] sm:$0xff] }
 0x179   :  { %v515_v54 = vpack.c.bf16 %v504_v52, %v503_v51 }
 0x17a   :  { %v364_v56 = vpop.f32.mrf.mxu1 }
 0x17b   :  { %598 = vmatmul.bf16.gmra.mxu3 %v515_v54  ;;  %v365_v58 = vadd.f32 %v1451_v49, %v364_v56 }
 0x17d   :  { %v1525_v62 = vadd.f32 %v465_v57, %v365_v58  ;;  %v1187_v57 = vld [vmem:[%s1668_s2 + $0x100] sm:$0xff] }
 0x17e   :  { %701 = vmatpush.bf16.msrb.mxu0 %v1187_v57  ;;  %v1223_v58 = vld [vmem:[%s1669_s3 + $0x3] ss:$0 sm:$0xff] }
 0x17f   :  { %v505_v5 = vmax.f32 %v1525_v62, 0.0  ;;  %v1200_v62 = vld [vmem:[%s1668_s2 + $0x168] sm:$0xff] }
 0x182   :  { %v366_v59 = vpop.f32.mrf.mxu1 }
 0x183   :  { %v367_v3 = vadd.f32 %v1451_v49, %v366_v59 }
 0x185   :  { %v1529_v4 = vadd.f32 %v467_v2, %v367_v3 }
 0x187   :  { %v506_v6 = vmax.f32 %v1529_v4, 0.0 }
 0x189   :  { %v516_v7 = vpack.c.bf16 %v506_v6, %v505_v5 }
 0x18a   :  { %v369_v9 = vpop.f32.mrf.mxu1 }
 0x18b   :  { %603 = vmatmul.bf16.gmra.mxu3 %v516_v7  ;;  %v370_v17 = vadd.f32 %v1451_v49, %v369_v9 }
 0x18d   :  { %v1548_v20 = vadd.f32 %v470_v16, %v370_v17 }
 0x18f   :  { %v507_v30 = vmax.f32 %v1548_v20, 0.0  ;;  %v1201_v20 = vld [vmem:[%s1668_s2 + $0x170] sm:$0xff] }
 0x192   :  { %v371_v19 = vpop.f32.mrf.mxu1 }
 0x193   :  { %v372_v23 = vadd.f32 %v1451_v49, %v371_v19 }
 0x195   :  { %v1552_v27 = vadd.f32 %v472_v22, %v372_v23 }
 0x197   :  { %v508_v31 = vmax.f32 %v1552_v27, 0.0  ;;  %v1202_v27 = vld [vmem:[%s1668_s2 + $0x178] sm:$0xff] }
 0x198   :  { %848 = vmatpush.bf16.msrb.mxu2 %v1202_v27 }
 0x199   :  { %v517_v32 = vpack.c.bf16 %v508_v31, %v507_v30 }
 0x19a   :  { %v374_v34 = vpop.f32.mrf.mxu1 }
 0x19b   :  { %608 = vmatmul.bf16.gmra.mxu3 %v517_v32  ;;  %v375_v40 = vadd.f32 %v1451_v49, %v374_v34 }
 0x19c   :  { %849 = vmatpush.bf16.msrb.mxu2 %v1201_v20 }
 0x19d   :  { %v1571_v44 = vadd.f32 %v475_v36, %v375_v40 }
 0x19f   :  { %v509_v54 = vmax.f32 %v1571_v44, 0.0 }
 0x1a0   :  { %850 = vmatpush.bf16.msrb.mxu2 %v1200_v62 }
 0x1a2   :  { %v376_v43 = vpop.f32.mrf.mxu1 }
 0x1a3   :  { %v377_v47 = vadd.f32 %v1451_v49, %v376_v43 }
 0x1a4   :  { %851 = vmatpush.bf16.msrb.mxu2 %v1199_v50 }
 0x1a5   :  { %v1578_v53 = vadd.f32 %v477_v45, %v377_v47 }
 0x1a7   :  { %v510_v56 = vmax.f32 %v1578_v53, 0.0 }
 0x1a8   :  { %852 = vmatpush.bf16.msrb.mxu2 %v1198_v46 }
 0x1a9   :  { %v518_v55 = vpack.c.bf16 %v510_v56, %v509_v54 }
 0x1ab   :  { %613 = vmatmul.bf16.gmra.mxu3 %v518_v55 }
 0x1be   :  { %v579_v49 = vpop.f32.mrf.mxu3 }
 0x1bf   :  { %v580_v59 = vadd.f32 %v1223_v58, %v579_v49 }
 0x1c1   :  { %v619_v3 = vmax.f32 %v580_v59, 0.0 }
 0x1c6   :  { %v581_v61 = vpop.f32.mrf.mxu3 }
 0x1c7   :  { %v582_v2 = vadd.f32 %v1223_v58, %v581_v61 }
 0x1c9   :  { %v620_v7 = vmax.f32 %v582_v2, 0.0 }
 0x1cb   :  { %v635_v9 = vpack.c.bf16 %v620_v7, %v619_v3 }
 0x1cd   :  { %702 = vmatmul.bf16.vlgmr.msrb.gmra.mxu0 %v635_v9 }
 0x1ce   :  { %v584_v10 = vpop.f32.mrf.mxu3 }
 0x1cf   :  { %v585_v12 = vadd.f32 %v1223_v58, %v584_v10 }
 0x1d1   :  { %v621_v17 = vmax.f32 %v585_v12, 0.0 }
 0x1d6   :  { %v586_v15 = vpop.f32.mrf.mxu3 }
 0x1d7   :  { %v587_v16 = vadd.f32 %v1223_v58, %v586_v15 }
 0x1d9   :  { %v622_v18 = vmax.f32 %v587_v16, 0.0 }
 0x1db   :  { %v636_v19 = vpack.c.bf16 %v622_v18, %v621_v17 }
 0x1dd   :  { %707 = vmatmul.bf16.gmra.mxu0 %v636_v19 }
 0x1de   :  { %v589_v22 = vpop.f32.mrf.mxu3 }
 0x1df   :  { %v590_v23 = vadd.f32 %v1223_v58, %v589_v22 }
 0x1e1   :  { %v623_v32 = vmax.f32 %v590_v23, 0.0 }
 0x1e6   :  { %v591_v28 = vpop.f32.mrf.mxu3 }
 0x1e7   :  { %v592_v29 = vadd.f32 %v1223_v58, %v591_v28 }
 0x1e9   :  { %v624_v34 = vmax.f32 %v592_v29, 0.0 }
 0x1eb   :  { %v637_v35 = vpack.c.bf16 %v624_v34, %v623_v32 }
 0x1ed   :  { %712 = vmatmul.bf16.gmra.mxu0 %v637_v35 }
 0x1ee   :  { %v594_v36 = vpop.f32.mrf.mxu3 }
 0x1ef   :  { %v595_v40 = vadd.f32 %v1223_v58, %v594_v36 }
 0x1f1   :  { %v625_v43 = vmax.f32 %v595_v40, 0.0 }
 0x1f6   :  { %v596_v41 = vpop.f32.mrf.mxu3 }
 0x1f7   :  { %v597_v42 = vadd.f32 %v1223_v58, %v596_v41 }
 0x1f9   :  { %v626_v45 = vmax.f32 %v597_v42, 0.0 }
 0x1fb   :  { %v638_v47 = vpack.c.bf16 %v626_v45, %v625_v43  ;;  %v1224_v45 = vld [vmem:[%s1669_s3 + $0x4] ss:$0 sm:$0xff] }
 0x1fd   :  { %717 = vmatmul.bf16.gmra.mxu0 %v638_v47 }
 0x1fe   :  { %v599_v48 = vpop.f32.mrf.mxu3 }
 0x1ff   :  { %v600_v57 = vadd.f32 %v1223_v58, %v599_v48 }
 0x201   :  { %v627_v59 = vmax.f32 %v600_v57, 0.0 }
 0x206   :  { %v601_v55 = vpop.f32.mrf.mxu3 }
 0x207   :  { %v602_v49 = vadd.f32 %v1223_v58, %v601_v55 }
 0x209   :  { %v628_v61 = vmax.f32 %v602_v49, 0.0 }
 0x20b   :  { %v639_v2 = vpack.c.bf16 %v628_v61, %v627_v59 }
 0x20d   :  { %722 = vmatmul.bf16.gmra.mxu0 %v639_v2 }
 0x20e   :  { %v604_v3 = vpop.f32.mrf.mxu3 }
 0x20f   :  { %v605_v7 = vadd.f32 %v1223_v58, %v604_v3 }
 0x211   :  { %v629_v12 = vmax.f32 %v605_v7, 0.0 }
 0x216   :  { %v606_v9 = vpop.f32.mrf.mxu3 }
 0x217   :  { %v607_v10 = vadd.f32 %v1223_v58, %v606_v9 }
 0x219   :  { %v630_v15 = vmax.f32 %v607_v10, 0.0 }
 0x21b   :  { %v640_v16 = vpack.c.bf16 %v630_v15, %v629_v12 }
 0x21d   :  { %727 = vmatmul.bf16.gmra.mxu0 %v640_v16 }
 0x21e   :  { %v609_v17 = vpop.f32.mrf.mxu3 }
 0x21f   :  { %v610_v18 = vadd.f32 %v1223_v58, %v609_v17 }
 0x221   :  { %v631_v23 = vmax.f32 %v610_v18, 0.0 }
 0x226   :  { %v611_v19 = vpop.f32.mrf.mxu3 }
 0x227   :  { %v612_v22 = vadd.f32 %v1223_v58, %v611_v19 }
 0x229   :  { %v632_v28 = vmax.f32 %v612_v22, 0.0 }
 0x22b   :  { %v641_v29 = vpack.c.bf16 %v632_v28, %v631_v23 }
 0x22d   :  { %732 = vmatmul.bf16.gmra.mxu0 %v641_v29 }
 0x22e   :  { %v614_v32 = vpop.f32.mrf.mxu3 }
 0x22f   :  { %v615_v34 = vadd.f32 %v1223_v58, %v614_v32 }
 0x231   :  { %v633_v40 = vmax.f32 %v615_v34, 0.0 }
 0x236   :  { %v616_v35 = vpop.f32.mrf.mxu3 }
 0x237   :  { %v617_v36 = vadd.f32 %v1223_v58, %v616_v35 }
 0x239   :  { %v634_v41 = vmax.f32 %v617_v36, 0.0 }
 0x23b   :  { %v642_v42 = vpack.c.bf16 %v634_v41, %v633_v40 }
 0x23d   :  { %737 = vmatmul.bf16.gmra.mxu0 %v642_v42 }
 0x24a   :  { %v703_v43 = vpop.f32.mrf.mxu0 }
 0x24b   :  { %v704_v47 = vadd.f32 %v1224_v45, %v703_v43 }
 0x24d   :  { %v743_v57 = vadd.f32 %v704_v47, %v495_v0 }
 0x24f   :  { %v759_v59 = vmax.f32 %v743_v57, 0.0 }
 0x252   :  { %v705_v48 = vpop.f32.mrf.mxu0 }
 0x253   :  { %v706_v55 = vadd.f32 %v1224_v45, %v705_v48 }
 0x255   :  { %v744_v49 = vadd.f32 %v706_v55, %v496_v1 }
 0x257   :  { %v760_v58 = vmax.f32 %v744_v49, 0.0 }
 0x259   :  { %v1599_v61 = vpack.c.bf16 %v760_v58, %v759_v59 }
 0x25a   :  { %v708_v2 = vpop.f32.mrf.mxu0 }
 0x25b   :  { %v709_v3 = vadd.f32 %v1224_v45, %v708_v2 }
 0x25d   :  { %v745_v9 = vadd.f32 %v709_v3, %v497_v13 }
 0x25f   :  { %v761_v60 = vmax.f32 %v745_v9, 0.0 }
 0x262   :  { %v710_v7 = vpop.f32.mrf.mxu0 }
 0x263   :  { %v711_v10 = vadd.f32 %v1224_v45, %v710_v7 }
 0x265   :  { %v746_v12 = vadd.f32 %v711_v10, %v498_v14 }
 0x267   :  { %v762_v0 = vmax.f32 %v746_v12, 0.0 }
 0x269   :  { %v1605_v15 = vpack.c.bf16 %v762_v0, %v761_v60  ;;  %v1196_v60 = vld [vmem:[%s1668_s2 + $0x148] sm:$0xff]  ;;  %v1195_v0 = vld [vmem:[%s1668_s2 + $0x140] sm:$0xff] }
 0x26a   :  { %v713_v63 = vpop.f32.mrf.mxu0 }
 0x26b   :  { %v714_v1 = vadd.f32 %v1224_v45, %v713_v63  ;;  %v146_v63 = vld [vmem:[%s1667_s1] sm:$0xf] }
 0x26d   :  { %v747_v17 = vadd.f32 %v714_v1, %v499_v25 }
 0x26f   :  { %v763_v8 = vmax.f32 %v747_v17, 0.0 }
 0x272   :  { %v715_v16 = vpop.f32.mrf.mxu0 }
 0x273   :  { %v716_v18 = vadd.f32 %v1224_v45, %v715_v16 }
 0x275   :  { %v748_v19 = vadd.f32 %v716_v18, %v500_v26 }
 0x277   :  { %v764_v13 = vmax.f32 %v748_v19, 0.0 }
 0x279   :  { %v777_v22 = vpack.c.bf16 %v764_v13, %v763_v8 }
 0x27a   :  { %v718_v23 = vpop.f32.mrf.mxu0 }
 0x27b   :  { %v719_v11 = vadd.f32 %v1224_v45, %v718_v23 }
 0x27d   :  { %v749_v28 = vadd.f32 %v719_v11, %v501_v38 }
 0x27f   :  { %v765_v34 = vmax.f32 %v749_v28, 0.0 }
 0x282   :  { %v720_v14 = vpop.f32.mrf.mxu0 }
 0x283   :  { %v721_v29 = vadd.f32 %v1224_v45, %v720_v14 }
 0x285   :  { %v750_v32 = vadd.f32 %v721_v29, %v502_v39 }
 0x287   :  { %v766_v21 = vmax.f32 %v750_v32, 0.0 }
 0x289   :  { %v778_v25 = vpack.c.bf16 %v766_v21, %v765_v34 }
 0x28a   :  { %v723_v35 = vpop.f32.mrf.mxu0 }
 0x292   :  { %v725_v36 = vpop.f32.mrf.mxu0 }
 0x293   :  { %v726_v3 = vadd.f32 %v1224_v45, %v725_v36 }
 0x295   :  { %v752_v4 = vadd.f32 %v726_v3, %v504_v52 }
 0x29a   :  { %v728_v24 = vpop.f32.mrf.mxu0 }
 0x29b   :  { %v729_v49 = vadd.f32 %v1224_v45, %v728_v24 }
 0x29d   :  { %v753_v53 = vadd.f32 %v729_v49, %v505_v5  ;;  %v768_v5 = vmax.f32 %v752_v4, 0.0 }
 0x29f   :  { %v769_v10 = vmax.f32 %v753_v53, 0.0 }
 0x2a2   :  { %v730_v26 = vpop.f32.mrf.mxu0 }
 0x2a3   :  { %v731_v37 = vadd.f32 %v1224_v45, %v730_v26 }
 0x2a5   :  { %v754_v7 = vadd.f32 %v731_v37, %v506_v6 }
 0x2a7   :  { %v770_v6 = vmax.f32 %v754_v7, 0.0 }
 0x2aa   :  { %v733_v40 = vpop.f32.mrf.mxu0 }
 0x2ab   :  { %v734_v57 = vadd.f32 %v1224_v45, %v733_v40 }
 0x2ad   :  { %v755_v59 = vadd.f32 %v734_v57, %v507_v30 }
 0x2b2   :  { %v735_v41 = vpop.f32.mrf.mxu0 }
 0x2b3   :  { %v736_v47 = vadd.f32 %v1224_v45, %v735_v41 }
 0x2b5   :  { %v756_v39 = vadd.f32 %v736_v47, %v508_v31  ;;  %v724_v31 = vadd.f32 %v1224_v45, %v723_v35 }
 0x2b7   :  { %v772_v44 = vmax.f32 %v756_v39, 0.0  ;;  %v751_v9 = vadd.f32 %v724_v31, %v503_v51  ;;  %v1197_v51 = vld [vmem:[%s1668_s2 + $0x150] sm:$0xff] }
 0x2b8   :  { %853 = vmatpush.bf16.msrb.mxu2 %v1197_v51 }
 0x2b9   :  { %v767_v12 = vmax.f32 %v751_v9, 0.0 }
 0x2ba   :  { %v738_v42 = vpop.f32.mrf.mxu0 }
 0x2bb   :  { %v739_v43 = vadd.f32 %v1224_v45, %v738_v42  ;;  %v779_v52 = vpack.c.bf16 %v768_v5, %v767_v12 }
 0x2bc   :  { %854 = vmatpush.bf16.msrb.mxu2 %v1196_v60 }
 0x2bd   :  { %v757_v33 = vadd.f32 %v739_v43, %v509_v54 }
 0x2bf   :  { %v773_v58 = vmax.f32 %v757_v33, 0.0 }
 0x2c0   :  { %855 = vmatpush.bf16.msrb.mxu2 %v1195_v0 }
 0x2c2   :  { %v740_v48 = vpop.f32.mrf.mxu0 }
 0x2c3   :  { %v741_v38 = vadd.f32 %v1224_v45, %v740_v48  ;;  %v780_v45 = vpack.c.bf16 %v770_v6, %v769_v10 }
 0x2c5   :  { %v758_v55 = vadd.f32 %v741_v38, %v510_v56  ;;  %v771_v56 = vmax.f32 %v755_v59, 0.0 }
 0x2c7   :  { %v774_v2 = vmax.f32 %v758_v55, 0.0  ;;  %v781_v30 = vpack.c.bf16 %v772_v44, %v771_v56 }
 0x2c9   :  { %v782_v54 = vpack.c.bf16 %v774_v2, %v773_v58 }
 0x2cb   :  { %783 = vmatpush.bf16.msra.mxu1 %v782_v54 }
 0x2cf   :  { %784 = vmatpush.bf16.msra.mxu1 %v781_v30 }
 0x2d3   :  { %785 = vmatpush.bf16.msra.mxu1 %v780_v45 }
 0x2d7   :  { %786 = vmatpush.bf16.msra.mxu1 %v779_v52 }
 0x2db   :  { %787 = vmatpush.bf16.msra.mxu1 %v778_v25 }
 0x2df   :  { %788 = vmatpush.bf16.msra.mxu1 %v777_v22 }
 0x2e3   :  { %789 = vmatpush.bf16.msra.mxu1 %v1605_v15  ;;  %v1225_v15 = vld [vmem:[%s1669_s3 + $0x5] ss:$0 sm:$0xff] }
 0x2e7   :  { %790 = vmatpush.bf16.msra.mxu1 %v1599_v61 }
 0x2ea   :  { %791 = vmatmul.bf16.vlgmr.msra.gmra.mxu1 %v146_v63 }
 0x367   :  { %v792_v1 = vpop.f32.mrf.mxu1 }
 0x368   :  { %v796_v16 = vpack.c.bf16 %v792_v1, %v792_v1 }
 0x36a   :  { %856 = vmatmul.bf16.vlgmr.msrb.gmra.mxu2 %v796_v16 }
 0x36f   :  { %v794_v17 = vpop.f32.mrf.mxu1 }
 0x3ed   :  { %v857_v61 = vpop.f32.mrf.mxu2 }
 0x3ee   :  { %v858_v18 = vadd.f32 %v1225_v15, %v857_v61 }
 0x3f0   :  { %861 = vst [vmem:[#allocation2] sm:$0xff] %v858_v18 }
 0x3f1   :  { %872 = dma.vmem_to_hbm [thread:$0]  %s868_s25, 128, %s870_s27, [#allocation3]  }
 0x3f5   :  { %v859_v19 = vpop.f32.mrf.mxu2 }
 0x3f6   :  { %1250 = dma.done.wait [#allocation3], 128  }
 0x3f7   :  { %1251 = vsyncadd [#allocation3], 4294967168 }
 0x3f8   :  { %877 = vsyncpa [#allocation3], 1 }

</bundles_post_ra>
